<compile_context>
chip_gen: v5e
topology: v5e:2x2
jax: 0.10.0
libtpu: 0.0.40
codegen_flags: <defaults>
</compile_context>

<pallas_src>
import math

import jax
import jax.numpy as jnp
from jax.experimental import pallas as pl
from jax.experimental.pallas import tpu as pltpu

# ---------------- config (mirrors __C) ----------------
HIDDEN_SIZE = 32
MULTI_HEAD = 4
HEAD_DIM = HIDDEN_SIZE // MULTI_HEAD
DROPOUT_R = 0.1  # unused (eval mode)

BATCH = 2
SEQ = 8


def _mhatt_kernel(q_ref, k_ref, v_ref, bias_ref,
                  wqh_ref, bqh_ref, wkh_ref, bkh_ref, wvh_ref, bvh_ref,
                  wmh_ref, bm_ref, out_ref):
    B, N, H = q_ref.shape
    nh = wqh_ref.shape[0]
    X = B * nh  # fused (batch, head) dim -> ONE batch dim for every einsum

    def rep_heads(x):
        # (B, ...) -> (B*nh, ...): each batch element repeated nh times (b-major, h-minor).
        # Leading-dim broadcast + leading-dim merge only: no sublane/lane relayout.
        return jnp.broadcast_to(x[:, None], (B, nh) + x.shape[1:]).reshape((X,) + x.shape[1:])

    def rep_batch(w):
        # (nh, ...) -> (B*nh, ...): per-head params tiled across the batch dim.
        return jnp.broadcast_to(w[None], (B,) + w.shape).reshape((X,) + w.shape[1:])

    q = rep_heads(q_ref[...])            # (X, N, H)
    k = rep_heads(k_ref[...])            # (X, N, H)
    v = rep_heads(v_ref[...])            # (X, N, H)
    bias = rep_heads(bias_ref[...])      # (X, 1, N) additive key-padding bias (0 / -1e9)

    wq = rep_batch(wqh_ref[...]); bq = rep_batch(bqh_ref[...])   # (X, H, dh), (X, 1, dh)
    wk = rep_batch(wkh_ref[...]); bk = rep_batch(bkh_ref[...])
    wv = rep_batch(wvh_ref[...]); bv = rep_batch(bvh_ref[...])

    # Per-(batch, head) projections as one batched matmul each.
    # 1/sqrt(head_dim) is already folded into wq/bq host-side.
    qh = jnp.einsum('xnk,xkd->xnd', q, wq, preferred_element_type=jnp.float32) + bq
    kh = jnp.einsum('xnk,xkd->xnd', k, wk, preferred_element_type=jnp.float32) + bk
    vh = jnp.einsum('xnk,xkd->xnd', v, wv, preferred_element_type=jnp.float32) + bv

    # Scores: contraction over the head dim -> no explicit transpose of K.
    s = jnp.einsum('xqd,xkd->xqk', qh, kh, preferred_element_type=jnp.float32) + bias

    # Numerically stable softmax; reciprocal instead of a divide.
    s = s - jnp.max(s, axis=-1, keepdims=True)
    e = jnp.exp(s)
    denom = jnp.sum(e, axis=-1, keepdims=True)
    # approx=True would use the EUP fast path (~1e-3 rel err); exact kept to stay well
    # inside the f32 tolerance against the reference softmax.
    att = e * pl.reciprocal(denom, approx=False)

    ctx = jnp.einsum('xqk,xkd->xqd', att, vh, preferred_element_type=jnp.float32)  # (X, N, dh)

    # Merge linear decomposed per head: sum_h ctx_h @ Wm_h == concat_h(ctx_h) @ Wm.
    wm = rep_batch(wmh_ref[...])                                                    # (X, dh, H)
    part = jnp.einsum('xqd,xdo->xqo', ctx, wm, preferred_element_type=jnp.float32)  # (X, N, H)

    # Head reduction: nh-1 cheap vector adds over the leading dim (no per-head matmul loop).
    part = part.reshape(B, nh, N, H)
    merged = part[:, 0]
    for h in range(1, nh):
        merged = merged + part[:, h]
    merged = merged + bm_ref[...]                                                   # (B, N, H)

    out_ref[...] = merged.astype(out_ref.dtype)


def mhatt_forward(v, k, q, mask, kparams):
    """v, k, q: (B, N, H) f32; mask: (B, 1, 1, N) bool (True = masked) or None."""
    B, N, H = q.shape
    assert H == HIDDEN_SIZE

    if mask is None:
        bias = jnp.zeros((B, 1, N), jnp.float32)
    else:
        # Tiny (B, 1, N) additive bias: 0.0 keep, -1e9 masked (same effect as masked_fill).
        bias = jnp.where(mask, -1e9, 0.0).astype(jnp.float32).reshape(B, 1, N)

    vmem = pl.BlockSpec(memory_space=pltpu.MemorySpace.VMEM)

    return pl.pallas_call(
        _mhatt_kernel,
        out_shape=jax.ShapeDtypeStruct((B, N, H), jnp.float32),
        in_specs=[vmem] * 12,
        out_specs=vmem,
    )(q, k, v, bias,
      kparams["wqh"], kparams["bqh"],
      kparams["wkh"], kparams["bkh"],
      kparams["wvh"], kparams["bvh"],
      kparams["wmh"], kparams["bm"])


def _init_linear(key, in_dim, out_dim):
    # Deterministic init; weight stored as (in, out) so math is x @ W + b (nn.Linear semantics).
    k1, k2 = jax.random.split(key)
    bound = 1.0 / math.sqrt(in_dim)
    w = jax.random.uniform(k1, (in_dim, out_dim), jnp.float32, -bound, bound)
    b = jax.random.uniform(k2, (1, out_dim), jnp.float32, -bound, bound)
    return w, b


def prepare_kernel_params(params):
    """One-time host-side rearrangement of the nn.Linear params into per-head layouts."""
    (wq, bq), (wk, bk), (wv, bv), (wm, bm) = (
        params["q"], params["k"], params["v"], params["merge"])
    scale = 1.0 / math.sqrt(HEAD_DIM)

    def per_head_in(w, b):
        # (H_in, H_out) -> (nh, H_in, dh); (1, H_out) -> (nh, 1, dh)
        wh = w.reshape(HIDDEN_SIZE, MULTI_HEAD, HEAD_DIM).transpose(1, 0, 2)
        bh = b.reshape(MULTI_HEAD, 1, HEAD_DIM)
        return wh, bh

    # Fold the 1/sqrt(head_dim) score scale into the Q projection (weights AND bias).
    wqh, bqh = per_head_in(wq * scale, bq * scale)
    wkh, bkh = per_head_in(wk, bk)
    wvh, bvh = per_head_in(wv, bv)
    wmh = wm.reshape(MULTI_HEAD, HEAD_DIM, HIDDEN_SIZE)   # merge rows grouped by head
    return dict(wqh=wqh, bqh=bqh, wkh=wkh, bkh=bkh, wvh=wvh, bvh=bvh, wmh=wmh, bm=bm)


def _reference(v, k, q, mask, params):
    """Pure-JAX reference mirroring the PyTorch forward (dropout = identity)."""
    B, N, H = q.shape
    dh = H // MULTI_HEAD

    def proj(x, wb):
        w, b = wb
        y = x @ w + b[0]
        return y.reshape(B, N, MULTI_HEAD, dh).transpose(0, 2, 1, 3)  # (B, nh, N, dh)

    vp = proj(v, params["v"])
    kp = proj(k, params["k"])
    qp = proj(q, params["q"])

    scores = jnp.einsum("bhqd,bhkd->bhqk", qp, kp) / math.sqrt(dh)
    if mask is not None:
        scores = jnp.where(mask, -1e9, scores)          # mask (B,1,1,N) broadcasts
    att = jax.nn.softmax(scores, axis=-1)
    out = jnp.einsum("bhqk,bhkd->bhqd", att, vp)        # (B, nh, N, dh)
    out = out.transpose(0, 2, 1, 3).reshape(B, N, H)
    wm, bm = params["merge"]
    return out @ wm + bm[0]


if __name__ == "__main__":
    key = jax.random.PRNGKey(0)
    kq, kk, kv, km, kx1, kx2, kx3 = jax.random.split(key, 7)

    params = {
        "q": _init_linear(kq, HIDDEN_SIZE, HIDDEN_SIZE),
        "k": _init_linear(kk, HIDDEN_SIZE, HIDDEN_SIZE),
        "v": _init_linear(kv, HIDDEN_SIZE, HIDDEN_SIZE),
        "merge": _init_linear(km, HIDDEN_SIZE, HIDDEN_SIZE),
    }
    kparams = prepare_kernel_params(params)   # one-time host-side weight rearrangement

    q = jax.random.normal(kx1, (BATCH, SEQ, HIDDEN_SIZE), jnp.float32)
    k = jax.random.normal(kx2, (BATCH, SEQ, HIDDEN_SIZE), jnp.float32)
    v = jax.random.normal(kx3, (BATCH, SEQ, HIDDEN_SIZE), jnp.float32)
    # padding mask: mask out the last 2 key positions of batch 1
    mask = jnp.zeros((BATCH, 1, 1, SEQ), jnp.bool_)
    mask = mask.at[1, 0, 0, -2:].set(True)

    out = jax.block_until_ready(mhatt_forward(v, k, q, mask, kparams))
    ref = _reference(v, k, q, mask, params)

    assert out.shape == (BATCH, SEQ, HIDDEN_SIZE)
    err = jnp.max(jnp.abs(out - ref))
    assert jnp.allclose(out, ref, atol=1e-4, rtol=1e-4), f"max abs diff {err}"
    print("KERNEL_OK")
</pallas_src>

<mosaic_0001>
module attributes {stable_mosaic.version = 11 : i64} {
  func.func @_mhatt_kernel(%arg0: memref<2x8x32xf32, #tpu.memory_space<vmem>>, %arg1: memref<2x8x32xf32, #tpu.memory_space<vmem>>, %arg2: memref<2x8x32xf32, #tpu.memory_space<vmem>>, %arg3: memref<2x1x8xf32, #tpu.memory_space<vmem>>, %arg4: memref<4x32x8xf32, #tpu.memory_space<vmem>>, %arg5: memref<4x1x8xf32, #tpu.memory_space<vmem>>, %arg6: memref<4x32x8xf32, #tpu.memory_space<vmem>>, %arg7: memref<4x1x8xf32, #tpu.memory_space<vmem>>, %arg8: memref<4x32x8xf32, #tpu.memory_space<vmem>>, %arg9: memref<4x1x8xf32, #tpu.memory_space<vmem>>, %arg10: memref<4x8x32xf32, #tpu.memory_space<vmem>>, %arg11: memref<1x32xf32, #tpu.memory_space<vmem>>, %arg12: memref<2x8x32xf32, #tpu.memory_space<vmem>>) attributes {dimension_semantics = [], scalar_prefetch = 0 : i64, scratch_operands = 0 : i64, tpu.core_type = #tpu.core_type<tc>} {
    %c0 = arith.constant 0 : index
    %c0_0 = arith.constant 0 : index
    %c0_1 = arith.constant 0 : index
    %0 = vector.load %arg0[%c0, %c0_0, %c0_1] : memref<2x8x32xf32, #tpu.memory_space<vmem>>, vector<2x8x32xf32>
    %1 = vector.shape_cast %0 : vector<2x8x32xf32> to vector<2x1x8x32xf32>
    %2 = vector.shape_cast %1 : vector<2x1x8x32xf32> to vector<2x1x8x32xf32>
    %3 = vector.broadcast %2 : vector<2x1x8x32xf32> to vector<2x4x8x32xf32>
    %4 = vector.shape_cast %3 : vector<2x4x8x32xf32> to vector<8x8x32xf32>
    %c0_2 = arith.constant 0 : index
    %c0_3 = arith.constant 0 : index
    %c0_4 = arith.constant 0 : index
    %5 = vector.load %arg1[%c0_2, %c0_3, %c0_4] : memref<2x8x32xf32, #tpu.memory_space<vmem>>, vector<2x8x32xf32>
    %6 = vector.shape_cast %5 : vector<2x8x32xf32> to vector<2x1x8x32xf32>
    %7 = vector.shape_cast %6 : vector<2x1x8x32xf32> to vector<2x1x8x32xf32>
    %8 = vector.broadcast %7 : vector<2x1x8x32xf32> to vector<2x4x8x32xf32>
    %9 = vector.shape_cast %8 : vector<2x4x8x32xf32> to vector<8x8x32xf32>
    %c0_5 = arith.constant 0 : index
    %c0_6 = arith.constant 0 : index
    %c0_7 = arith.constant 0 : index
    %10 = vector.load %arg2[%c0_5, %c0_6, %c0_7] : memref<2x8x32xf32, #tpu.memory_space<vmem>>, vector<2x8x32xf32>
    %11 = vector.shape_cast %10 : vector<2x8x32xf32> to vector<2x1x8x32xf32>
    %12 = vector.shape_cast %11 : vector<2x1x8x32xf32> to vector<2x1x8x32xf32>
    %13 = vector.broadcast %12 : vector<2x1x8x32xf32> to vector<2x4x8x32xf32>
    %14 = vector.shape_cast %13 : vector<2x4x8x32xf32> to vector<8x8x32xf32>
    %c0_8 = arith.constant 0 : index
    %c0_9 = arith.constant 0 : index
    %c0_10 = arith.constant 0 : index
    %15 = vector.load %arg3[%c0_8, %c0_9, %c0_10] : memref<2x1x8xf32, #tpu.memory_space<vmem>>, vector<2x1x8xf32>
    %16 = vector.shape_cast %15 : vector<2x1x8xf32> to vector<2x1x1x8xf32>
    %17 = vector.shape_cast %16 : vector<2x1x1x8xf32> to vector<2x1x1x8xf32>
    %18 = vector.broadcast %17 : vector<2x1x1x8xf32> to vector<2x4x1x8xf32>
    %19 = vector.shape_cast %18 : vector<2x4x1x8xf32> to vector<8x1x8xf32>
    %c0_11 = arith.constant 0 : index
    %c0_12 = arith.constant 0 : index
    %c0_13 = arith.constant 0 : index
    %20 = vector.load %arg4[%c0_11, %c0_12, %c0_13] : memref<4x32x8xf32, #tpu.memory_space<vmem>>, vector<4x32x8xf32>
    %21 = vector.shape_cast %20 : vector<4x32x8xf32> to vector<1x4x32x8xf32>
    %22 = vector.shape_cast %21 : vector<1x4x32x8xf32> to vector<1x4x32x8xf32>
    %23 = vector.broadcast %22 : vector<1x4x32x8xf32> to vector<2x4x32x8xf32>
    %24 = vector.shape_cast %23 : vector<2x4x32x8xf32> to vector<8x32x8xf32>
    %c0_14 = arith.constant 0 : index
    %c0_15 = arith.constant 0 : index
    %c0_16 = arith.constant 0 : index
    %25 = vector.load %arg5[%c0_14, %c0_15, %c0_16] : memref<4x1x8xf32, #tpu.memory_space<vmem>>, vector<4x1x8xf32>
    %26 = vector.shape_cast %25 : vector<4x1x8xf32> to vector<1x4x1x8xf32>
    %27 = vector.shape_cast %26 : vector<1x4x1x8xf32> to vector<1x4x1x8xf32>
    %28 = vector.broadcast %27 : vector<1x4x1x8xf32> to vector<2x4x1x8xf32>
    %29 = vector.shape_cast %28 : vector<2x4x1x8xf32> to vector<8x1x8xf32>
    %c0_17 = arith.constant 0 : index
    %c0_18 = arith.constant 0 : index
    %c0_19 = arith.constant 0 : index
    %30 = vector.load %arg6[%c0_17, %c0_18, %c0_19] : memref<4x32x8xf32, #tpu.memory_space<vmem>>, vector<4x32x8xf32>
    %31 = vector.shape_cast %30 : vector<4x32x8xf32> to vector<1x4x32x8xf32>
    %32 = vector.shape_cast %31 : vector<1x4x32x8xf32> to vector<1x4x32x8xf32>
    %33 = vector.broadcast %32 : vector<1x4x32x8xf32> to vector<2x4x32x8xf32>
    %34 = vector.shape_cast %33 : vector<2x4x32x8xf32> to vector<8x32x8xf32>
    %c0_20 = arith.constant 0 : index
    %c0_21 = arith.constant 0 : index
    %c0_22 = arith.constant 0 : index
    %35 = vector.load %arg7[%c0_20, %c0_21, %c0_22] : memref<4x1x8xf32, #tpu.memory_space<vmem>>, vector<4x1x8xf32>
    %36 = vector.shape_cast %35 : vector<4x1x8xf32> to vector<1x4x1x8xf32>
    %37 = vector.shape_cast %36 : vector<1x4x1x8xf32> to vector<1x4x1x8xf32>
    %38 = vector.broadcast %37 : vector<1x4x1x8xf32> to vector<2x4x1x8xf32>
    %39 = vector.shape_cast %38 : vector<2x4x1x8xf32> to vector<8x1x8xf32>
    %c0_23 = arith.constant 0 : index
    %c0_24 = arith.constant 0 : index
    %c0_25 = arith.constant 0 : index
    %40 = vector.load %arg8[%c0_23, %c0_24, %c0_25] : memref<4x32x8xf32, #tpu.memory_space<vmem>>, vector<4x32x8xf32>
    %41 = vector.shape_cast %40 : vector<4x32x8xf32> to vector<1x4x32x8xf32>
    %42 = vector.shape_cast %41 : vector<1x4x32x8xf32> to vector<1x4x32x8xf32>
    %43 = vector.broadcast %42 : vector<1x4x32x8xf32> to vector<2x4x32x8xf32>
    %44 = vector.shape_cast %43 : vector<2x4x32x8xf32> to vector<8x32x8xf32>
    %c0_26 = arith.constant 0 : index
    %c0_27 = arith.constant 0 : index
    %c0_28 = arith.constant 0 : index
    %45 = vector.load %arg9[%c0_26, %c0_27, %c0_28] : memref<4x1x8xf32, #tpu.memory_space<vmem>>, vector<4x1x8xf32>
    %46 = vector.shape_cast %45 : vector<4x1x8xf32> to vector<1x4x1x8xf32>
    %47 = vector.shape_cast %46 : vector<1x4x1x8xf32> to vector<1x4x1x8xf32>
    %48 = vector.broadcast %47 : vector<1x4x1x8xf32> to vector<2x4x1x8xf32>
    %49 = vector.shape_cast %48 : vector<2x4x1x8xf32> to vector<8x1x8xf32>
    "tpu.trace_start"() <{level = 10 : i32, message = "xnk,xkd->xnd"}> : () -> ()
    %cst = arith.constant dense<0.000000e+00> : vector<8x8x8xf32>
    %50 = tpu.matmul %4, %24, %cst {dimension_numbers = #tpu.dot_dimension_numbers<[2], [1], [1], [2], [0, 0, 0, 1, 1, 2], [0], [0]>} : vector<8x8x32xf32>, vector<8x32x8xf32>, vector<8x8x8xf32> -> vector<8x8x8xf32>
    "tpu.trace_stop"() : () -> ()
    %51 = vector.broadcast %29 : vector<8x1x8xf32> to vector<8x8x8xf32>
    %52 = arith.addf %50, %51 : vector<8x8x8xf32>
    "tpu.trace_start"() <{level = 10 : i32, message = "xnk,xkd->xnd"}> : () -> ()
    %cst_29 = arith.constant dense<0.000000e+00> : vector<8x8x8xf32>
    %53 = tpu.matmul %9, %34, %cst_29 {dimension_numbers = #tpu.dot_dimension_numbers<[2], [1], [1], [2], [0, 0, 0, 1, 1, 2], [0], [0]>} : vector<8x8x32xf32>, vector<8x32x8xf32>, vector<8x8x8xf32> -> vector<8x8x8xf32>
    "tpu.trace_stop"() : () -> ()
    %54 = vector.broadcast %39 : vector<8x1x8xf32> to vector<8x8x8xf32>
    %55 = arith.addf %53, %54 : vector<8x8x8xf32>
    "tpu.trace_start"() <{level = 10 : i32, message = "xnk,xkd->xnd"}> : () -> ()
    %cst_30 = arith.constant dense<0.000000e+00> : vector<8x8x8xf32>
    %56 = tpu.matmul %14, %44, %cst_30 {dimension_numbers = #tpu.dot_dimension_numbers<[2], [1], [1], [2], [0, 0, 0, 1, 1, 2], [0], [0]>} : vector<8x8x32xf32>, vector<8x32x8xf32>, vector<8x8x8xf32> -> vector<8x8x8xf32>
    "tpu.trace_stop"() : () -> ()
    %57 = vector.broadcast %49 : vector<8x1x8xf32> to vector<8x8x8xf32>
    %58 = arith.addf %56, %57 : vector<8x8x8xf32>
    "tpu.trace_start"() <{level = 10 : i32, message = "xqd,xkd->xqk"}> : () -> ()
    %cst_31 = arith.constant dense<0.000000e+00> : vector<8x8x8xf32>
    %59 = tpu.matmul %52, %55, %cst_31 {dimension_numbers = #tpu.dot_dimension_numbers<[2], [2], [1], [1], [0, 0, 0, 1, 1, 1], [0], [0]>} : vector<8x8x8xf32>, vector<8x8x8xf32>, vector<8x8x8xf32> -> vector<8x8x8xf32>
    "tpu.trace_stop"() : () -> ()
    %60 = vector.broadcast %19 : vector<8x1x8xf32> to vector<8x8x8xf32>
    %61 = arith.addf %59, %60 : vector<8x8x8xf32>
    %cst_32 = arith.constant dense<0xFF800000> : vector<8x8xf32>
    %62 = vector.multi_reduction <maximumf>, %61, %cst_32 [2] : vector<8x8x8xf32> to vector<8x8xf32>
    %63 = vector.shape_cast %62 : vector<8x8xf32> to vector<8x8x1xf32>
    %64 = vector.broadcast %63 : vector<8x8x1xf32> to vector<8x8x8xf32>
    %65 = arith.subf %61, %64 : vector<8x8x8xf32>
    %66 = math.exp %65 : vector<8x8x8xf32>
    %cst_33 = arith.constant dense<0.000000e+00> : vector<8x8xf32>
    %67 = vector.multi_reduction <add>, %66, %cst_33 [2] : vector<8x8x8xf32> to vector<8x8xf32>
    %68 = vector.shape_cast %67 : vector<8x8xf32> to vector<8x8x1xf32>
    %69 = tpu.reciprocal %68 : vector<8x8x1xf32> -> vector<8x8x1xf32>
    %70 = vector.broadcast %69 : vector<8x8x1xf32> to vector<8x8x8xf32>
    %71 = arith.mulf %66, %70 : vector<8x8x8xf32>
    "tpu.trace_start"() <{level = 10 : i32, message = "xqk,xkd->xqd"}> : () -> ()
    %cst_34 = arith.constant dense<0.000000e+00> : vector<8x8x8xf32>
    %72 = tpu.matmul %71, %58, %cst_34 {dimension_numbers = #tpu.dot_dimension_numbers<[2], [1], [1], [2], [0, 0, 0, 1, 1, 2], [0], [0]>} : vector<8x8x8xf32>, vector<8x8x8xf32>, vector<8x8x8xf32> -> vector<8x8x8xf32>
    "tpu.trace_stop"() : () -> ()
    %c0_35 = arith.constant 0 : index
    %c0_36 = arith.constant 0 : index
    %c0_37 = arith.constant 0 : index
    %73 = vector.load %arg10[%c0_35, %c0_36, %c0_37] : memref<4x8x32xf32, #tpu.memory_space<vmem>>, vector<4x8x32xf32>
    %74 = vector.shape_cast %73 : vector<4x8x32xf32> to vector<1x4x8x32xf32>
    %75 = vector.shape_cast %74 : vector<1x4x8x32xf32> to vector<1x4x8x32xf32>
    %76 = vector.broadcast %75 : vector<1x4x8x32xf32> to vector<2x4x8x32xf32>
    %77 = vector.shape_cast %76 : vector<2x4x8x32xf32> to vector<8x8x32xf32>
    "tpu.trace_start"() <{level = 10 : i32, message = "xqd,xdo->xqo"}> : () -> ()
    %cst_38 = arith.constant dense<0.000000e+00> : vector<8x8x32xf32>
    %78 = tpu.matmul %72, %77, %cst_38 {dimension_numbers = #tpu.dot_dimension_numbers<[2], [1], [1], [2], [0, 0, 0, 1, 1, 2], [0], [0]>} : vector<8x8x8xf32>, vector<8x8x32xf32>, vector<8x8x32xf32> -> vector<8x8x32xf32>
    "tpu.trace_stop"() : () -> ()
    %79 = vector.shape_cast %78 : vector<8x8x32xf32> to vector<2x4x8x32xf32>
    %80 = vector.extract_strided_slice %79 {offsets = [0, 0, 0, 0], sizes = [2, 1, 8, 32], strides = [1, 1, 1, 1]} : vector<2x4x8x32xf32> to vector<2x1x8x32xf32>
    %81 = vector.shape_cast %80 : vector<2x1x8x32xf32> to vector<2x8x32xf32>
    %82 = vector.extract_strided_slice %79 {offsets = [0, 1, 0, 0], sizes = [2, 1, 8, 32], strides = [1, 1, 1, 1]} : vector<2x4x8x32xf32> to vector<2x1x8x32xf32>
    %83 = vector.shape_cast %82 : vector<2x1x8x32xf32> to vector<2x8x32xf32>
    %84 = arith.addf %81, %83 : vector<2x8x32xf32>
    %85 = vector.extract_strided_slice %79 {offsets = [0, 2, 0, 0], sizes = [2, 1, 8, 32], strides = [1, 1, 1, 1]} : vector<2x4x8x32xf32> to vector<2x1x8x32xf32>
    %86 = vector.shape_cast %85 : vector<2x1x8x32xf32> to vector<2x8x32xf32>
    %87 = arith.addf %84, %86 : vector<2x8x32xf32>
    %88 = vector.extract_strided_slice %79 {offsets = [0, 3, 0, 0], sizes = [2, 1, 8, 32], strides = [1, 1, 1, 1]} : vector<2x4x8x32xf32> to vector<2x1x8x32xf32>
    %89 = vector.shape_cast %88 : vector<2x1x8x32xf32> to vector<2x8x32xf32>
    %90 = arith.addf %87, %89 : vector<2x8x32xf32>
    %c0_39 = arith.constant 0 : index
    %c0_40 = arith.constant 0 : index
    %91 = vector.load %arg11[%c0_39, %c0_40] : memref<1x32xf32, #tpu.memory_space<vmem>>, vector<1x32xf32>
    %92 = vector.shape_cast %91 : vector<1x32xf32> to vector<1x1x32xf32>
    %93 = vector.broadcast %92 : vector<1x1x32xf32> to vector<2x8x32xf32>
    %94 = arith.addf %90, %93 : vector<2x8x32xf32>
    %c0_41 = arith.constant 0 : index
    %c0_42 = arith.constant 0 : index
    %c0_43 = arith.constant 0 : index
    %95 = vector.load %arg12[%c0_41, %c0_42, %c0_43] : memref<2x8x32xf32, #tpu.memory_space<vmem>>, vector<2x8x32xf32>
    tpu.vector_store %arg12[%c0_41, %c0_42, %c0_43], %94 {strides = array<i32>} : memref<2x8x32xf32, #tpu.memory_space<vmem>>, vector<2x8x32xf32>,
    return
  }
}

</mosaic_0001>

<bundles_post_ra>
// kernel: tpu_custom_call.1
= control target key start
LH: loop header
LB: loop body
LE: loop exit
PB: predicated region body
PF: predicated region fallthrough
CT: control target
= control target key end

     0   :  { %vm122_vm0 = vcmask 261120   ;;  %s2060_s0 = inlined_call_operand.vmem [shape: f32[2,8,32], index: 0, kind: input, shape index: {}]   ;;  %s2061_s1 = inlined_call_operand.vmem [shape: f32[2,8,32], index: 1, kind: input, shape index: {}]   ;;  %s2062_s2 = inlined_call_operand.vmem [shape: f32[2,8,32], index: 2, kind: input, shape index: {}]   ;;  %s2063_s3 = inlined_call_operand.vmem [shape: f32[2,1,8], index: 3, kind: input, shape index: {}]   ;;  %s2064_s4 = inlined_call_operand.vmem [shape: f32[4,32,8], index: 4, kind: input, shape index: {}]   ;;  %s2065_s5 = inlined_call_operand.vmem [shape: f32[4,1,8], index: 5, kind: input, shape index: {}]   ;;  %s2066_s6 = inlined_call_operand.vmem [shape: f32[4,32,8], index: 6, kind: input, shape index: {}]   ;;  %s2067_s7 = inlined_call_operand.vmem [shape: f32[4,1,8], index: 7, kind: input, shape index: {}]   ;;  %s2068_s8 = inlined_call_operand.vmem [shape: f32[4,32,8], index: 8, kind: input, shape index: {}]   ;;  %s2069_s9 = inlined_call_operand.vmem [shape: f32[4,1,8], index: 9, kind: input, shape index: {}]   ;;  %s2070_s10 = inlined_call_operand.vmem [shape: f32[4,8,32], index: 10, kind: input, shape index: {}]   ;;  %s2071_s11 = inlined_call_operand.vmem [shape: f32[1,32], index: 11, kind: input, shape index: {}]   ;;  %s2072_s12 = inlined_call_operand.hbm [shape: f32[2,8,32], index: 12, kind: output, shape index: {}]  }
   0x1   :  { %v57_v0 = vld [vmem:[%s2064_s4 + $0x38] sm:$0xff]  ;;  %v56_v3 = vld [vmem:[%s2064_s4 + $0x30] sm:$0xff]  ;;  %v55_v6 = vld [vmem:[%s2064_s4 + $0x28] sm:$0xff] }
   0x2   :  { %v61_v1 = vld [vmem:[%s2064_s4 + $0x58] sm:$0xff]  ;;  %158 = vmatpush.msra.mxu1 %v57_v0  ;;  %v60_v4 = vld [vmem:[%s2064_s4 + $0x50] sm:$0xff]  ;;  %v59_v7 = vld [vmem:[%s2064_s4 + $0x48] sm:$0xff] }
   0x3   :  { %v65_v2 = vld [vmem:[%s2064_s4 + $0x78] sm:$0xff]  ;;  %178 = vmatpush.msra.mxu2 %v61_v1  ;;  %v64_v5 = vld [vmem:[%s2064_s4 + $0x70] sm:$0xff]  ;;  %v63_v8 = vld [vmem:[%s2064_s4 + $0x68] sm:$0xff] }
   0x4   :  { %198 = vmatpush.msra.mxu3 %v65_v2  ;;  %159 = vmatpush.msra.mxu1 %v56_v3  ;;  %v54_v9 = vld [vmem:[%s2064_s4 + $0x20] sm:$0xff]  ;;  %v53_v11 = vld [vmem:[%s2064_s4 + $0x18] sm:$0xff]  ;;  %v52_v14 = vld [vmem:[%s2064_s4 + $0x10] sm:$0xff] }
   0x5   :  { %179 = vmatpush.msra.mxu2 %v60_v4  ;;  %v58_v10 = vld [vmem:[%s2064_s4 + $0x40] sm:$0xff]  ;;  %138 = vmatpush.msra.mxu0 %v53_v11  ;;  %v51_v15 = vld [vmem:[%s2064_s4 + $0x8] sm:$0xff]  ;;  %v77_v18 = vld [vmem:[%s2066_s6 + $0x38] sm:$0xff] }
   0x6   :  { %199 = vmatpush.msra.mxu3 %v64_v5  ;;  %160 = vmatpush.msra.mxu1 %v55_v6  ;;  %v62_v12 = vld [vmem:[%s2064_s4 + $0x60] sm:$0xff]  ;;  %v43_v17 = vld [vmem:[%s2060_s0 + $0x8] sm:$0xff]  ;;  %v81_v19 = vld [vmem:[%s2066_s6 + $0x58] sm:$0xff] }
   0x7   :  { %180 = vmatpush.msra.mxu2 %v59_v7  ;;  %v42_v13 = vld [vmem:[%s2060_s0] sm:$0xff]  ;;  %139 = vmatpush.msra.mxu0 %v52_v14  ;;  %v85_v20 = vld [vmem:[%s2066_s6 + $0x78] sm:$0xff] }
   0x8   :  { %200 = vmatpush.msra.mxu3 %v63_v8  ;;  %161 = vmatpush.msra.mxu1 %v54_v9  ;;  %v50_v16 = vld [vmem:[%s2064_s4] sm:$0xff] }
   0x9   :  { %181 = vmatpush.msra.mxu2 %v58_v10  ;;  %1457 = vmatmul.msk.f32.vlgmr.msra.gmra.mxu1 %vm122_vm0, %v42_v13 }
   0xa   :  { %201 = vmatpush.msra.mxu3 %v62_v12  ;;  %1458 = vmatmul.msk.f32.vlgmr.msra.gmra.mxu2 %vm122_vm0, %v42_v13 }
   0xb   :  { %1459 = vmatmul.msk.f32.vlgmr.msra.gmra.mxu3 %vm122_vm0, %v42_v13  ;;  %241 = vmatpush.msrb.mxu1 %v57_v0 }
   0xc   :  { %261 = vmatpush.msrb.mxu2 %v61_v1  ;;  %281 = vmatpush.msrb.mxu3 %v65_v2 }
   0xd   :  { %242 = vmatpush.msrb.mxu1 %v56_v3  ;;  %140 = vmatpush.msra.mxu0 %v51_v15 }
   0xe   :  { %262 = vmatpush.msrb.mxu2 %v60_v4  ;;  %282 = vmatpush.msrb.mxu3 %v64_v5 }
   0xf   :  { %243 = vmatpush.msrb.mxu1 %v55_v6  ;;  %141 = vmatpush.msra.mxu0 %v50_v16 }
  0x10   :  { %263 = vmatpush.msrb.mxu2 %v59_v7  ;;  %283 = vmatpush.msrb.mxu3 %v63_v8 }
  0x11   :  { %244 = vmatpush.msrb.mxu1 %v54_v9 }
  0x12   :  { %264 = vmatpush.msrb.mxu2 %v58_v10  ;;  %284 = vmatpush.msrb.mxu3 %v62_v12 }
  0x13   :  { %1461 = vmatmul.msk.f32.vlgmr.msrb.gmra.mxu1 %vm122_vm0, %v43_v17 }
  0x14   :  { %17 = vsyncpa [#allocation3], 0  ;;  %1462 = vmatmul.msk.f32.vlgmr.msrb.gmra.mxu2 %vm122_vm0, %v43_v17  ;;  %1463 = vmatmul.msk.f32.vlgmr.msrb.gmra.mxu3 %vm122_vm0, %v43_v17  ;;  %v76_v21 = vld [vmem:[%s2066_s6 + $0x30] sm:$0xff]  ;;  %v75_v24 = vld [vmem:[%s2066_s6 + $0x28] sm:$0xff]  ;;  %vm651_vm1 = vcmask 64512   ;;  %s1588_s16 = smov [#allocation2]  }
  0x15   :  { %1456 = vmatmul.msk.f32.vlgmr.msra.gmra.mxu0 %vm122_vm0, %v42_v13  ;;  %336 = vmatpush.msra.mxu1 %v77_v18  ;;  %v80_v22 = vld [vmem:[%s2066_s6 + $0x50] sm:$0xff]  ;;  %v79_v25 = vld [vmem:[%s2066_s6 + $0x48] sm:$0xff]  ;;  %v74_v27 = vld [vmem:[%s2066_s6 + $0x20] sm:$0xff]  ;;  %s1442_s17 = sshll.u32 %s1588_s16, 4  ;;  %s1590_s19 = smov 8   ;;  %s1443_s17 = int_to_ptr.vmem [resolvable:$true] %s1442_s17 }
  0x16   :  { %v84_v23 = vld [vmem:[%s2066_s6 + $0x70] sm:$0xff]  ;;  %356 = vmatpush.msra.mxu2 %v81_v19  ;;  %376 = vmatpush.msra.mxu3 %v85_v20  ;;  %v83_v26 = vld [vmem:[%s2066_s6 + $0x68] sm:$0xff]  ;;  %v78_v28 = vld [vmem:[%s2066_s6 + $0x40] sm:$0xff] }
  0x17   :  { %221 = vmatpush.msrb.mxu0 %v53_v11  ;;  %337 = vmatpush.msra.mxu1 %v76_v21  ;;  %v82_v29 = vld [vmem:[%s2066_s6 + $0x60] sm:$0xff]  ;;  %v73_v31 = vld [vmem:[%s2066_s6 + $0x18] sm:$0xff]  ;;  %v72_v32 = vld [vmem:[%s2066_s6 + $0x10] sm:$0xff] }
  0x18   :  { %357 = vmatpush.msra.mxu2 %v80_v22  ;;  %377 = vmatpush.msra.mxu3 %v84_v23  ;;  %v44_v30 = vld [vmem:[%s2061_s1] sm:$0xff]  ;;  %v71_v33 = vld [vmem:[%s2066_s6 + $0x8] sm:$0xff]  ;;  %v97_v36 = vld [vmem:[%s2068_s8 + $0x38] sm:$0xff] }
  0x19   :  { %222 = vmatpush.msrb.mxu0 %v52_v14  ;;  %338 = vmatpush.msra.mxu1 %v75_v24  ;;  %v70_v34 = vld [vmem:[%s2066_s6] sm:$0xff]  ;;  %v45_v35 = vld [vmem:[%s2061_s1 + $0x8] sm:$0xff]  ;;  %v96_v37 = vld [vmem:[%s2068_s8 + $0x30] sm:$0xff]  ;;  %s1444_s6 = sshll.u32 %s2072_s12, 4  ;;  %s1445_s6 = int_to_ptr.hbm [resolvable:$true] %s1444_s6 }
  0x1a   :  { %358 = vmatpush.msra.mxu2 %v79_v25  ;;  %378 = vmatpush.msra.mxu3 %v83_v26  ;;  %v95_v38 = vld [vmem:[%s2068_s8 + $0x28] sm:$0xff]  ;;  %v101_v39 = vld [vmem:[%s2068_s8 + $0x58] sm:$0xff]  ;;  %v94_v41 = vld [vmem:[%s2068_s8 + $0x20] sm:$0xff] }
  0x1b   :  { %223 = vmatpush.msrb.mxu0 %v51_v15  ;;  %339 = vmatpush.msra.mxu1 %v74_v27  ;;  %v105_v40 = vld [vmem:[%s2068_s8 + $0x78] sm:$0xff]  ;;  %v46_v42 = vld [vmem:[%s2062_s2] sm:$0xff]  ;;  %v100_v43 = vld [vmem:[%s2068_s8 + $0x50] sm:$0xff] }
  0x1c   :  { %359 = vmatpush.msra.mxu2 %v78_v28  ;;  %379 = vmatpush.msra.mxu3 %v82_v29  ;;  %v104_v44 = vld [vmem:[%s2068_s8 + $0x70] sm:$0xff]  ;;  %v93_v45 = vld [vmem:[%s2068_s8 + $0x18] sm:$0xff]  ;;  %v99_v46 = vld [vmem:[%s2068_s8 + $0x48] sm:$0xff] }
  0x1d   :  { %224 = vmatpush.msrb.mxu0 %v50_v16  ;;  %1465 = vmatmul.msk.f32.vlgmr.msra.gmra.mxu1 %vm122_vm0, %v44_v30  ;;  %v103_v47 = vld [vmem:[%s2068_s8 + $0x68] sm:$0xff]  ;;  %v92_v48 = vld [vmem:[%s2068_s8 + $0x10] sm:$0xff]  ;;  %v98_v49 = vld [vmem:[%s2068_s8 + $0x40] sm:$0xff] }
  0x1e   :  { %1466 = vmatmul.msk.f32.vlgmr.msra.gmra.mxu2 %vm122_vm0, %v44_v30  ;;  %1467 = vmatmul.msk.f32.vlgmr.msra.gmra.mxu3 %vm122_vm0, %v44_v30  ;;  %v102_v50 = vld [vmem:[%s2068_s8 + $0x60] sm:$0xff]  ;;  %v91_v51 = vld [vmem:[%s2068_s8 + $0x8] sm:$0xff] }
  0x1f   :  { %1460 = vmatmul.msk.f32.vlgmr.msrb.gmra.mxu0 %vm122_vm0, %v43_v17  ;;  %439 = vmatpush.msrb.mxu2 %v81_v19  ;;  %v90_v52 = vld [vmem:[%s2068_s8] sm:$0xff]  ;;  %v47_v53 = vld [vmem:[%s2062_s2 + $0x8] sm:$0xff] }
  0x20   :  { %459 = vmatpush.msrb.mxu3 %v85_v20  ;;  %316 = vmatpush.msra.mxu0 %v73_v31  ;;  %v1519_v61 = vld [vmem:[%s2067_s7 + $0x1] ss:$0 sm:$0xff]  ;;  %v1520_v3 = vld [vmem:[%s2067_s7 + $0x2] ss:$0 sm:$0xff]  ;;  %v1521_v4 = vld [vmem:[%s2067_s7 + $0x3] ss:$0 sm:$0xff] }
  0x21   :  { %419 = vmatpush.msrb.mxu1 %v77_v18  ;;  %440 = vmatpush.msrb.mxu2 %v80_v22  ;;  %v1515_v62 = vld [vmem:[%s2065_s5 + $0x1] ss:$0 sm:$0xff]  ;;  %v1516_v5 = vld [vmem:[%s2065_s5 + $0x2] ss:$0 sm:$0xff]  ;;  %v1517_v6 = vld [vmem:[%s2065_s5 + $0x3] ss:$0 sm:$0xff] }
  0x22   :  { %460 = vmatpush.msrb.mxu3 %v84_v23  ;;  %317 = vmatpush.msra.mxu0 %v72_v32  ;;  %v1522_v11 = vld [vmem:[%s2067_s7] ss:$0 sm:$0xff] }
  0x23   :  { %420 = vmatpush.msrb.mxu1 %v76_v21  ;;  %441 = vmatpush.msrb.mxu2 %v79_v25  ;;  %v1518_v12 = vld [vmem:[%s2065_s5] ss:$0 sm:$0xff] }
  0x24   :  { %461 = vmatpush.msrb.mxu3 %v83_v26  ;;  %318 = vmatpush.msra.mxu0 %v71_v33 }
  0x25   :  { %421 = vmatpush.msrb.mxu1 %v75_v24  ;;  %442 = vmatpush.msrb.mxu2 %v78_v28 }
  0x26   :  { %462 = vmatpush.msrb.mxu3 %v82_v29  ;;  %319 = vmatpush.msra.mxu0 %v70_v34 }
  0x27   :  { %422 = vmatpush.msrb.mxu1 %v74_v27  ;;  %1470 = vmatmul.msk.f32.vlgmr.msrb.gmra.mxu2 %vm122_vm0, %v45_v35 }
  0x28   :  { %1471 = vmatmul.msk.f32.vlgmr.msrb.gmra.mxu3 %vm122_vm0, %v45_v35  ;;  %1464 = vmatmul.msk.f32.vlgmr.msra.gmra.mxu0 %vm122_vm0, %v44_v30  ;;  %v1523_v30 = vld [vmem:[%s2069_s9 + $0x1] ss:$0 sm:$0xff] }
  0x29   :  { %1469 = vmatmul.msk.f32.vlgmr.msrb.gmra.mxu1 %vm122_vm0, %v45_v35  ;;  %399 = vmatpush.msrb.mxu0 %v73_v31 }
  0x2a   :  { %514 = vmatpush.msra.mxu1 %v97_v36  ;;  %534 = vmatpush.msra.mxu2 %v101_v39 }
  0x2b   :  { %400 = vmatpush.msrb.mxu0 %v72_v32  ;;  %554 = vmatpush.msra.mxu3 %v105_v40 }
  0x2c   :  { %515 = vmatpush.msra.mxu1 %v96_v37  ;;  %535 = vmatpush.msra.mxu2 %v100_v43 }
  0x2d   :  { %401 = vmatpush.msrb.mxu0 %v71_v33  ;;  %555 = vmatpush.msra.mxu3 %v104_v44  ;;  %v1524_v33 = vld [vmem:[%s2069_s9] ss:$0 sm:$0xff] }
  0x2e   :  { %516 = vmatpush.msra.mxu1 %v95_v38  ;;  %536 = vmatpush.msra.mxu2 %v99_v46 }
  0x2f   :  { %402 = vmatpush.msrb.mxu0 %v70_v34  ;;  %556 = vmatpush.msra.mxu3 %v103_v47 }
  0x30   :  { %1468 = vmatmul.msk.f32.vlgmr.msrb.gmra.mxu0 %vm122_vm0, %v45_v35  ;;  %517 = vmatpush.msra.mxu1 %v94_v41 }
  0x31   :  { %1473 = vmatmul.msk.f32.vlgmr.msra.gmra.mxu1 %vm122_vm0, %v46_v42  ;;  %494 = vmatpush.msra.mxu0 %v93_v45 }
  0x32   :  { %597 = vmatpush.msrb.mxu1 %v97_v36  ;;  %537 = vmatpush.msra.mxu2 %v98_v49  ;;  %v1525_v36 = vld [vmem:[%s2069_s9 + $0x2] ss:$0 sm:$0xff] }
  0x33   :  { %495 = vmatpush.msra.mxu0 %v92_v48  ;;  %557 = vmatpush.msra.mxu3 %v102_v50 }
  0x34   :  { %598 = vmatpush.msrb.mxu1 %v96_v37  ;;  %1474 = vmatmul.msk.f32.vlgmr.msra.gmra.mxu2 %vm122_vm0, %v46_v42 }
  0x35   :  { %496 = vmatpush.msra.mxu0 %v91_v51  ;;  %1475 = vmatmul.msk.f32.vlgmr.msra.gmra.mxu3 %vm122_vm0, %v46_v42 }
  0x36   :  { %599 = vmatpush.msrb.mxu1 %v95_v38  ;;  %617 = vmatpush.msrb.mxu2 %v101_v39  ;;  %v1526_v39 = vld [vmem:[%s2069_s9 + $0x3] ss:$0 sm:$0xff] }
  0x37   :  { %637 = vmatpush.msrb.mxu3 %v105_v40  ;;  %497 = vmatpush.msra.mxu0 %v90_v52 }
  0x38   :  { %600 = vmatpush.msrb.mxu1 %v94_v41  ;;  %1472 = vmatmul.msk.f32.vlgmr.msra.gmra.mxu0 %vm122_vm0, %v46_v42 }
  0x39   :  { %1477 = vmatmul.msk.f32.vlgmr.msrb.gmra.mxu1 %vm122_vm0, %v47_v53  ;;  %618 = vmatpush.msrb.mxu2 %v100_v43 }
  0x3a   :  { %638 = vmatpush.msrb.mxu3 %v104_v44  ;;  %577 = vmatpush.msrb.mxu0 %v93_v45 }
  0x3b   :  { %619 = vmatpush.msrb.mxu2 %v99_v46 }
  0x3c   :  { %639 = vmatpush.msrb.mxu3 %v103_v47  ;;  %578 = vmatpush.msrb.mxu0 %v92_v48 }
  0x3d   :  { %620 = vmatpush.msrb.mxu2 %v98_v49 }
  0x3e   :  { %640 = vmatpush.msrb.mxu3 %v102_v50  ;;  %579 = vmatpush.msrb.mxu0 %v91_v51  ;;  %v1527_v50 = vld [vmem:[%s2063_s3] ss:$0 sm:$0xff] }
  0x3f   :  { %1478 = vmatmul.msk.f32.vlgmr.msrb.gmra.mxu2 %vm122_vm0, %v47_v53  ;;  %1479 = vmatmul.msk.f32.vlgmr.msrb.gmra.mxu3 %vm122_vm0, %v47_v53 }
  0x40   :  { %580 = vmatpush.msrb.mxu0 %v90_v52 }
  0x41   :  { %1476 = vmatmul.msk.f32.vlgmr.msrb.gmra.mxu0 %vm122_vm0, %v47_v53 }
  0x86   :  { %v163_v54 = vpop.f32.mrf.mxu1 }
  0x87   :  { %v164_v1 = vadd.f32 %v1515_v62, %v163_v54 }
  0x8d   :  { %v183_v55 = vpop.f32.mrf.mxu2 }
  0x8e   :  { %v203_v56 = vpop.f32.mrf.mxu3  ;;  %v184_v13 = vadd.f32 %v1516_v5, %v183_v55 }
  0x8f   :  { %v204_v14 = vadd.f32 %v1517_v6, %v203_v56 }
  0x90   :  { %v246_v57 = vpop.f32.mrf.mxu1 }
  0x91   :  { %v247_v20 = vadd.f32 %v1515_v62, %v246_v57 }
  0x92   :  { %v143_v58 = vpop.f32.mrf.mxu0 }
  0x93   :  { %v144_v18 = vadd.f32 %v1518_v12, %v143_v58 }
  0x97   :  { %v266_v59 = vpop.f32.mrf.mxu2  ;;  %v286_v60 = vpop.f32.mrf.mxu3 }
  0x98   :  { %v267_v26 = vadd.f32 %v1516_v5, %v266_v59  ;;  %v287_v28 = vadd.f32 %v1517_v6, %v286_v60  ;;  %v1528_v60 = vld [vmem:[%s2063_s3 + $0x1] ss:$0 sm:$0xff] }
  0x9a   :  { %v341_v63 = vpop.f32.mrf.mxu1 }
  0x9b   :  { %v342_v0 = vadd.f32 %v1519_v61, %v341_v63 }
  0x9c   :  { %v226_v2 = vpop.f32.mrf.mxu0 }
  0x9d   :  { %1482 = vmatpush.xpose.msk.msra.mxu1 %vm651_vm1, %v342_v0  ;;  %v227_v29 = vadd.f32 %v1518_v12, %v226_v2 }
  0xa0   :  { %1483 = vmatmul.msk.f32.vlgmr.msra.gmra.mxu1 %vm651_vm1, %v164_v1 }
  0xa1   :  { %v361_v7 = vpop.f32.mrf.mxu2  ;;  %v381_v8 = vpop.f32.mrf.mxu3 }
  0xa2   :  { %v362_v9 = vadd.f32 %v1520_v3, %v361_v7  ;;  %v382_v10 = vadd.f32 %v1521_v4, %v381_v8 }
  0xa4   :  { %1484 = vmatpush.xpose.msk.msra.mxu2 %vm651_vm1, %v362_v9  ;;  %1486 = vmatpush.xpose.msk.msra.mxu3 %vm651_vm1, %v382_v10 }
  0xa5   :  { %v321_v15 = vpop.f32.mrf.mxu0 }
  0xa6   :  { %v322_v16 = vadd.f32 %v1522_v11, %v321_v15  ;;  %v424_v17 = vpop.f32.mrf.mxu1 }
  0xa7   :  { %v425_v19 = vadd.f32 %v1519_v61, %v424_v17  ;;  %1485 = vmatmul.msk.f32.vlgmr.msra.gmra.mxu2 %vm651_vm1, %v184_v13  ;;  %1487 = vmatmul.msk.f32.vlgmr.msra.gmra.mxu3 %vm651_vm1, %v204_v14 }
  0xa8   :  { %1480 = vmatpush.xpose.msk.msra.mxu0 %vm651_vm1, %v322_v16 }
  0xa9   :  { %1490 = vmatpush.xpose.msk.msrb.mxu1 %vm651_vm1, %v425_v19 }
  0xaa   :  { %v444_v21 = vpop.f32.mrf.mxu2 }
  0xab   :  { %v445_v22 = vadd.f32 %v1520_v3, %v444_v21  ;;  %v464_v23 = vpop.f32.mrf.mxu3  ;;  %1481 = vmatmul.msk.f32.vlgmr.msra.gmra.mxu0 %vm651_vm1, %v144_v18 }
  0xac   :  { %v465_v24 = vadd.f32 %v1521_v4, %v464_v23  ;;  %1491 = vmatmul.msk.f32.vlgmr.msrb.gmra.mxu1 %vm651_vm1, %v247_v20 }
  0xad   :  { %v404_v25 = vpop.f32.mrf.mxu0  ;;  %1492 = vmatpush.xpose.msk.msrb.mxu2 %vm651_vm1, %v445_v22 }
  0xae   :  { %v405_v27 = vadd.f32 %v1522_v11, %v404_v25  ;;  %1494 = vmatpush.xpose.msk.msrb.mxu3 %vm651_vm1, %v465_v24  ;;  %v519_v31 = vpop.f32.mrf.mxu1 }
  0xaf   :  { %v520_v32 = vadd.f32 %v1523_v30, %v519_v31 }
  0xb0   :  { %1488 = vmatpush.xpose.msk.msrb.mxu0 %vm651_vm1, %v405_v27  ;;  %1493 = vmatmul.msk.f32.vlgmr.msrb.gmra.mxu2 %vm651_vm1, %v267_v26 }
  0xb1   :  { %1495 = vmatmul.msk.f32.vlgmr.msrb.gmra.mxu3 %vm651_vm1, %v287_v28  ;;  %1093 = vmatpush.msra.mxu1 %v520_v32 }
  0xb3   :  { %1489 = vmatmul.msk.f32.vlgmr.msrb.gmra.mxu0 %vm651_vm1, %v227_v29 }
  0xb5   :  { %v499_v35 = vpop.f32.mrf.mxu0 }
  0xb6   :  { %v602_v34 = vpop.f32.mrf.mxu1  ;;  %v500_v38 = vadd.f32 %v1524_v33, %v499_v35 }
  0xb7   :  { %v603_v37 = vadd.f32 %v1523_v30, %v602_v34  ;;  %v539_v40 = vpop.f32.mrf.mxu2 }
  0xb8   :  { %1070 = vmatpush.msra.mxu0 %v500_v38  ;;  %v540_v41 = vadd.f32 %v1525_v36, %v539_v40  ;;  %v559_v42 = vpop.f32.mrf.mxu3 }
  0xb9   :  { %1185 = vmatpush.msrb.mxu1 %v603_v37  ;;  %v560_v43 = vadd.f32 %v1526_v39, %v559_v42 }
  0xba   :  { %1116 = vmatpush.msra.mxu2 %v540_v41 }
  0xbb   :  { %1139 = vmatpush.msra.mxu3 %v560_v43 }
  0xbe   :  { %v582_v44 = vpop.f32.mrf.mxu0 }
  0xbf   :  { %v583_v45 = vadd.f32 %v1524_v33, %v582_v44 }
  0xc1   :  { %1162 = vmatpush.msrb.mxu0 %v583_v45 }
  0xc2   :  { %v622_v46 = vpop.f32.mrf.mxu2  ;;  %v642_v48 = vpop.f32.mrf.mxu3 }
  0xc3   :  { %v623_v47 = vadd.f32 %v1525_v36, %v622_v46  ;;  %v643_v49 = vadd.f32 %v1526_v39, %v642_v48 }
  0xc5   :  { %1208 = vmatpush.msrb.mxu2 %v623_v47  ;;  %1231 = vmatpush.msrb.mxu3 %v643_v49 }
 0x11d   :  { %v701_v51 = vpop.f32.mrf.mxu1 }
 0x11e   :  { %v702_v52 = vadd.f32 %v1527_v50, %v701_v51 }
 0x120   :  { %v863_v53 = vsel %vm651_vm1, %v702_v52, -inf }
 0x121   :  { %864 = vmax.xlane.f32.xlu2 %v863_v53 }
 0x128   :  { %v675_v57 = vpop.f32.mrf.mxu0 }
 0x129   :  { %v676_v6 = vadd.f32 %v1527_v50, %v675_v57  ;;  %v805_v9 = vpop.f32.mrf.mxu1 }
 0x12a   :  { %v727_v54 = vpop.f32.mrf.mxu2  ;;  %v753_v55 = vpop.f32.mrf.mxu3  ;;  %v806_v10 = vadd.f32 %v1528_v60, %v805_v9 }
 0x12b   :  { %v728_v56 = vadd.f32 %v1527_v50, %v727_v54  ;;  %v754_v59 = vadd.f32 %v1527_v50, %v753_v55  ;;  %v860_v8 = vsel %vm651_vm1, %v676_v6, -inf }
 0x12c   :  { %v875_v11 = vsel %vm651_vm1, %v806_v10, -inf }
 0x12d   :  { %v866_v58 = vsel %vm651_vm1, %v728_v56, -inf  ;;  %v869_v1 = vsel %vm651_vm1, %v754_v59, -inf }
 0x12e   :  { %867 = vmax.xlane.f32.xlu0 %v866_v58 }
 0x130   :  { %v779_v2 = vpop.f32.mrf.mxu0 }
 0x131   :  { %v780_v5 = vadd.f32 %v1528_v60, %v779_v2 }
 0x133   :  { %v831_v61 = vpop.f32.mrf.mxu2  ;;  %v872_v7 = vsel %vm651_vm1, %v780_v5, -inf }
 0x134   :  { %v832_v62 = vadd.f32 %v1528_v60, %v831_v61  ;;  %v857_v63 = vpop.f32.mrf.mxu3 }
 0x135   :  { %v858_v0 = vadd.f32 %v1528_v60, %v857_v63 }
 0x136   :  { %v878_v3 = vsel %vm651_vm1, %v832_v62, -inf  ;;  %870 = vmax.xlane.f32.xlu0 %v869_v1 }
 0x137   :  { %879 = vmax.xlane.f32.xlu1 %v878_v3  ;;  %v881_v4 = vsel %vm651_vm1, %v858_v0, -inf }
 0x138   :  { %882 = vmax.xlane.f32.xlu2 %v881_v4 }
 0x13e   :  { %873 = vmax.xlane.f32.xlu0 %v872_v7 }
 0x13f   :  { %861 = vmax.xlane.f32.xlu1 %v860_v8 }
 0x147   :  { %876 = vmax.xlane.f32.xlu1 %v875_v11 }
 0x194   :  { %v865_v14 = vpop.xlane.xlu2 %864 }
 0x195   :  { %v885_v22 = vsub.f32 %v702_v52, %v865_v14 }
 0x197   :  { %v894_v27 = vmul.f32 1.442695, %v885_v22 }
 0x1a1   :  { %v868_v12 = vpop.xlane.xlu0 %867 }
 0x1a2   :  { %v886_v13 = vsub.f32 %v728_v56, %v868_v12 }
 0x1a4   :  { %v896_v15 = vmul.f32 1.442695, %v886_v13 }
 0x1a6   :  { %1530 = vpow2.f32 %v896_v15 }
 0x1a9   :  { %v871_v16 = vpop.xlane.xlu0 %870 }
 0x1aa   :  { %v880_v17 = vpop.xlane.xlu1 %879  ;;  %v887_v18 = vsub.f32 %v754_v59, %v871_v16 }
 0x1ab   :  { %v890_v19 = vsub.f32 %v832_v62, %v880_v17  ;;  %v883_v20 = vpop.xlane.xlu2 %882 }
 0x1ac   :  { %v1908_v21 = vpop.eup %1530  ;;  %v898_v23 = vmul.f32 1.442695, %v887_v18  ;;  %v891_v25 = vsub.f32 %v858_v0, %v883_v20 }
 0x1ad   :  { %v904_v24 = vmul.f32 1.442695, %v890_v19  ;;  %v914_v26 = vsel %vm651_vm1, %v1908_v21, 0.0 }
 0x1ae   :  { %1532 = vpow2.f32 %v898_v23  ;;  %915 = vadd.xlane.f32.xlu2 %v914_v26  ;;  %v906_v28 = vmul.f32 1.442695, %v891_v25 }
 0x1af   :  { %1534 = vpow2.f32 %v904_v24 }
 0x1b0   :  { %1536 = vpow2.f32 %v894_v27 }
 0x1b1   :  { %v874_v29 = vpop.xlane.xlu0 %873  ;;  %1538 = vpow2.f32 %v906_v28 }
 0x1b2   :  { %v862_v30 = vpop.xlane.xlu1 %861  ;;  %v888_v34 = vsub.f32 %v780_v5, %v874_v29 }
 0x1b3   :  { %v884_v31 = vsub.f32 %v676_v6, %v862_v30 }
 0x1b4   :  { %v1912_v32 = vpop.eup %1532  ;;  %v900_v38 = vmul.f32 1.442695, %v888_v34 }
 0x1b5   :  { %v1914_v33 = vpop.eup %1534  ;;  %v892_v35 = vmul.f32 1.442695, %v884_v31  ;;  %v917_v36 = vsel %vm651_vm1, %v1912_v32, 0.0 }
 0x1b6   :  { %918 = vadd.xlane.f32.xlu0 %v917_v36  ;;  %v926_v37 = vsel %vm651_vm1, %v1914_v33, 0.0  ;;  %v1920_v39 = vpop.eup %1536 }
 0x1b7   :  { %1540 = vpow2.f32 %v892_v35  ;;  %927 = vadd.xlane.f32.xlu1 %v926_v37  ;;  %v1922_v41 = vpop.eup %1538  ;;  %v911_v45 = vsel %vm651_vm1, %v1920_v39, 0.0 }
 0x1b8   :  { %1542 = vpow2.f32 %v900_v38  ;;  %v929_v46 = vsel %vm651_vm1, %v1922_v41, 0.0 }
 0x1ba   :  { %v877_v40 = vpop.xlane.xlu1 %876 }
 0x1bb   :  { %v889_v42 = vsub.f32 %v806_v10, %v877_v40 }
 0x1bd   :  { %v1924_v43 = vpop.eup %1540  ;;  %v902_v44 = vmul.f32 1.442695, %v889_v42 }
 0x1be   :  { %912 = vadd.xlane.f32.xlu0 %v911_v45  ;;  %v908_v47 = vsel %vm651_vm1, %v1924_v43, 0.0  ;;  %v1932_v48 = vpop.eup %1542 }
 0x1bf   :  { %1544 = vpow2.f32 %v902_v44  ;;  %930 = vadd.xlane.f32.xlu1 %v929_v46  ;;  %909 = vadd.xlane.f32.xlu2 %v908_v47  ;;  %v920_v50 = vsel %vm651_vm1, %v1932_v48, 0.0 }
 0x1c5   :  { %v1934_v49 = vpop.eup %1544 }
 0x1c6   :  { %v923_v51 = vsel %vm651_vm1, %v1934_v49, 0.0 }
 0x1c7   :  { %921 = vadd.xlane.f32.xlu2 %v920_v50  ;;  %924 = vadd.xlane.f32.xlu0 %v923_v51 }
 0x221   :  { %v916_v52 = vpop.xlane.xlu2 %915 }
 0x222   :  { %1546 = vrcp.f32 %v916_v52  ;;  %v969_v60 = vand.u32 2147483647, %v916_v52  ;;  %v971_v61 = vand.u32 2147483648, %v916_v52  ;;  %vm965_vm3 = vweird.f32 %v916_v52 }
 0x224   :  { %vm970_vm5 = vcmp.eq.f32.partialorder %v969_v60, 8.507059e+37  ;;  %v972_v6 = vor.u32 1.1754944e-38, %v971_v61 }
 0x228   :  { %v1547_v53 = vpop.eup %1546 }
 0x229   :  { %v961_v54 = vmul.f32 %v1547_v53, %v916_v52  ;;  %v919_v55 = vpop.xlane.xlu0 %918  ;;  %vm966_vm2 = vweird.f32 %v1547_v53 }
 0x22a   :  { %1548 = vrcp.f32 %v919_v55  ;;  %v928_v56 = vpop.xlane.xlu1 %927  ;;  %vm1940_vm4 = vmor %vm965_vm3, %vm966_vm2  ;;  %v983_v9 = vand.u32 2147483647, %v919_v55  ;;  %v985_v10 = vand.u32 2147483648, %v919_v55  ;;  %vm979_vm8 = vweird.f32 %v919_v55 }
 0x22b   :  { %v962_v57 = vsub.f32 1.0, %v961_v54  ;;  %1550 = vrcp.f32 %v928_v56  ;;  %v1025_v14 = vand.u32 2147483647, %v928_v56  ;;  %v1027_v16 = vand.u32 2147483648, %v928_v56 }
 0x22c   :  { %vm1959_vm10 = vcmp.eq.f32.partialorder %v983_v9, 8.507059e+37  ;;  %vm1021_vm11 = vweird.f32 %v928_v56  ;;  %v986_v25 = vor.u32 1.1754944e-38, %v985_v10 }
 0x22d   :  { %v963_v58 = vmul.f32 %v1547_v53, %v962_v57  ;;  %vm1970_vm13 = vcmp.eq.f32.partialorder %v1025_v14, 8.507059e+37  ;;  %v1028_v31 = vor.u32 1.1754944e-38, %v1027_v16 }
 0x22f   :  { %v964_v59 = vadd.f32 %v1547_v53, %v963_v58 }
 0x230   :  { %v1549_v62 = vpop.eup %1548 }
 0x231   :  { %v1551_v63 = vpop.eup %1550  ;;  %v975_v1 = vmul.f32 %v1549_v62, %v919_v55  ;;  %v1944_v2 = vpop.xlane.xlu0 %912  ;;  %v968_v3 = vsel %vm1940_vm4, %v1547_v53, %v964_v59  ;;  %vm980_vm6 = vweird.f32 %v1549_v62 }
 0x232   :  { %v1017_v4 = vmul.f32 %v1551_v63, %v928_v56  ;;  %1552 = vrcp.f32 %v1944_v2  ;;  %v1949_v5 = vpop.xlane.xlu2 %909  ;;  %v1951_v8 = vpop.xlane.xlu1 %930  ;;  %v973_v12 = vsel %vm970_vm5, %v972_v6, %v968_v3  ;;  %vm1022_vm7 = vweird.f32 %v1551_v63  ;;  %vm1955_vm9 = vmor %vm979_vm8, %vm980_vm6 }
 0x233   :  { %v976_v7 = vsub.f32 1.0, %v975_v1  ;;  %1554 = vrcp.f32 %v1949_v5  ;;  %v1046_v23 = vmul.f32 %v1908_v21, %v973_v12  ;;  %vm1966_vm12 = vmor %vm1021_vm11, %vm1022_vm7  ;;  %v955_v21 = vand.u32 2147483647, %v1944_v2 }
 0x234   :  { %v1018_v11 = vsub.f32 1.0, %v1017_v4  ;;  %1556 = vrcp.f32 %v1951_v8  ;;  %v957_v34 = vand.u32 2147483648, %v1944_v2  ;;  %vm951_vm14 = vweird.f32 %v1944_v2 }
 0x235   :  { %v977_v13 = vmul.f32 %v1549_v62, %v976_v7  ;;  %1498 = vmatmul.msk.f32.vlgmr.msra.gmra.mxu2 %vm651_vm1, %v1046_v23  ;;  %vm937_vm15 = vweird.f32 %v1949_v5  ;;  %v941_v44 = vand.u32 2147483647, %v1949_v5  ;;  %vm1994_vm3 = vcmp.eq.f32.partialorder %v955_v21, 8.507059e+37 }
 0x236   :  { %v1019_v15 = vmul.f32 %v1551_v63, %v1018_v11  ;;  %v958_v52 = vor.u32 1.1754944e-38, %v957_v34  ;;  %v943_v53 = vand.u32 2147483648, %v1949_v5  ;;  %v1039_v57 = vand.u32 2147483647, %v1951_v8 }
 0x237   :  { %v978_v17 = vadd.f32 %v1549_v62, %v977_v13  ;;  %v1041_v58 = vand.u32 2147483648, %v1951_v8  ;;  %vm942_vm8 = vcmp.eq.f32.partialorder %v941_v44, 8.507059e+37 }
 0x238   :  { %v1553_v18 = vpop.eup %1552  ;;  %v1020_v22 = vadd.f32 %v1551_v63, %v1019_v15  ;;  %vm1040_vm11 = vcmp.eq.f32.partialorder %v1039_v57, 8.507059e+37 }
 0x239   :  { %v982_v24 = vsel %vm1955_vm9, %v1549_v62, %v978_v17  ;;  %v947_v28 = vmul.f32 %v1553_v18, %v1944_v2  ;;  %v1555_v29 = vpop.eup %1554  ;;  %vm952_vm2 = vweird.f32 %v1553_v18  ;;  %v944_v2 = vor.u32 1.1754944e-38, %v943_v53 }
 0x23a   :  { %v1024_v30 = vsel %vm1966_vm12, %v1551_v63, %v1020_v22  ;;  %v1980_v35 = vpop.xlane.xlu2 %921  ;;  %v933_v37 = vmul.f32 %v1555_v29, %v1949_v5  ;;  %v1985_v38 = vpop.xlane.xlu0 %924  ;;  %v987_v42 = vsel %vm1959_vm10, %v986_v25, %v982_v24  ;;  %vm938_vm4 = vweird.f32 %v1555_v29  ;;  %vm953_vm5 = vmor %vm951_vm14, %vm952_vm2 }
 0x23b   :  { %v948_v36 = vsub.f32 1.0, %v947_v28  ;;  %v1557_v40 = vpop.eup %1556  ;;  %1558 = vrcp.f32 %v1980_v35  ;;  %v1029_v45 = vsel %vm1970_vm13, %v1028_v31, %v1024_v30  ;;  %v1047_v59 = vmul.f32 %v1912_v32, %v987_v42  ;;  %vm939_vm7 = vmor %vm937_vm15, %vm938_vm4  ;;  %v1239_v30 = vld [vmem:[%s2070_s10 + $0x18] sm:$0xff] }
 0x23c   :  { %v934_v47 = vsub.f32 1.0, %v933_v37  ;;  %v1031_v50 = vmul.f32 %v1557_v40, %v1951_v8  ;;  %1560 = vrcp.f32 %v1985_v38  ;;  %v1050_v60 = vmul.f32 %v1914_v33, %v1029_v45 }
 0x23d   :  { %v949_v46 = vmul.f32 %v1553_v18, %v948_v36  ;;  %vm1036_vm6 = vweird.f32 %v1557_v40  ;;  %1499 = vmatmul.msk.f32.vlgmr.msra.gmra.mxu3 %vm651_vm1, %v1047_v59  ;;  %vm1035_vm9 = vweird.f32 %v1951_v8  ;;  %v1042_v7 = vor.u32 1.1754944e-38, %v1041_v58 }
 0x23e   :  { %v935_v55 = vmul.f32 %v1555_v29, %v934_v47  ;;  %v1032_v56 = vsub.f32 1.0, %v1031_v50  ;;  %1502 = vmatmul.msk.f32.vlgmr.msrb.gmra.mxu2 %vm651_vm1, %v1050_v60  ;;  %vm1037_vm10 = vmor %vm1035_vm9, %vm1036_vm6  ;;  %v997_v13 = vand.u32 2147483647, %v1980_v35  ;;  %v999_v14 = vand.u32 2147483648, %v1980_v35  ;;  %1327 = vmatpush.msra.mxu3 %v1239_v30  ;;  %v1529_v50 = vld [vmem:[%s2071_s11] ss:$0 sm:$0xff] }
 0x23f   :  { %v950_v54 = vadd.f32 %v1553_v18, %v949_v46  ;;  %vm993_vm13 = vweird.f32 %v1980_v35  ;;  %v1011_v20 = vand.u32 2147483647, %v1985_v38  ;;  %s1589_s11 = smov 128  }
 0x240   :  { %v936_v62 = vadd.f32 %v1555_v29, %v935_v55  ;;  %v1033_v63 = vmul.f32 %v1557_v40, %v1032_v56  ;;  %vm998_vm2 = vcmp.eq.f32.partialorder %v997_v13, 8.507059e+37 }
 0x241   :  { %v954_v61 = vsel %vm953_vm5, %v1553_v18, %v950_v54  ;;  %v1559_v0 = vpop.eup %1558  ;;  %vm1012_vm5 = vcmp.eq.f32.partialorder %v1011_v20, 8.507059e+37 }
 0x242   :  { %v959_v1 = vsel %vm1994_vm3, %v958_v52, %v954_v61  ;;  %v940_v32 = vsel %vm939_vm7, %v1555_v29, %v936_v62  ;;  %v1034_v3 = vadd.f32 %v1557_v40, %v1033_v63  ;;  %v989_v33 = vmul.f32 %v1559_v0, %v1980_v35  ;;  %v1561_v4 = vpop.eup %1560  ;;  %v1238_v29 = vld [vmem:[%s2070_s10 + $0x10] sm:$0xff] }
 0x243   :  { %v945_v6 = vsel %vm942_vm8, %v944_v2, %v940_v32  ;;  %v1045_v9 = vmul.f32 %v1920_v39, %v959_v1  ;;  %v1003_v11 = vmul.f32 %v1561_v4, %v1985_v38  ;;  %vm994_vm12 = vweird.f32 %v1559_v0  ;;  %1304 = vmatpush.msra.mxu2 %v1238_v29 }
 0x244   :  { %v1038_v5 = vsel %vm1037_vm10, %v1557_v40, %v1034_v3  ;;  %v990_v10 = vsub.f32 1.0, %v989_v33  ;;  %v1044_v8 = vmul.f32 %v1924_v43, %v945_v6  ;;  %v1013_v39 = vand.u32 2147483648, %v1985_v38  ;;  %vm995_vm15 = vmor %vm993_vm13, %vm994_vm12 }
 0x245   :  { %v1043_v12 = vsel %vm1040_vm11, %v1042_v7, %v1038_v5  ;;  %1497 = vmatmul.msk.f32.vlgmr.msra.gmra.mxu1 %vm651_vm1, %v1045_v9  ;;  %v1004_v17 = vsub.f32 1.0, %v1003_v11  ;;  %vm1008_vm14 = vweird.f32 %v1561_v4  ;;  %v1000_v43 = vor.u32 1.1754944e-38, %v999_v14  ;;  %1396 = vmatpush.msrb.mxu2 %v1238_v29 }
 0x246   :  { %v1051_v15 = vmul.f32 %v1922_v41, %v1043_v12  ;;  %v991_v16 = vmul.f32 %v1559_v0, %v990_v10  ;;  %1496 = vmatmul.msk.f32.vlgmr.msra.gmra.mxu0 %vm651_vm1, %v1044_v8  ;;  %vm1007_vm3 = vweird.f32 %v1985_v38  ;;  %v1014_v24 = vor.u32 1.1754944e-38, %v1013_v39 }
 0x247   :  { %v1005_v19 = vmul.f32 %v1561_v4, %v1004_v17  ;;  %vm1009_vm4 = vmor %vm1007_vm3, %vm1008_vm14 }
 0x248   :  { %v992_v18 = vadd.f32 %v1559_v0, %v991_v16  ;;  %1503 = vmatmul.msk.f32.vlgmr.msrb.gmra.mxu3 %vm651_vm1, %v1051_v15 }
 0x249   :  { %v1006_v41 = vadd.f32 %v1561_v4, %v1005_v19  ;;  %1419 = vmatpush.msrb.mxu3 %v1239_v30 }
 0x24a   :  { %v996_v22 = vsel %vm995_vm15, %v1559_v0, %v992_v18 }
 0x24b   :  { %v1001_v23 = vsel %vm998_vm2, %v1000_v43, %v996_v22  ;;  %v1010_v26 = vsel %vm1009_vm4, %v1561_v4, %v1006_v41 }
 0x24c   :  { %v1048_v25 = vmul.f32 %v1932_v48, %v1001_v23  ;;  %v1015_v27 = vsel %vm1012_vm5, %v1014_v24, %v1010_v26  ;;  %v1236_v48 = vld [vmem:[%s2070_s10] sm:$0xff] }
 0x24d   :  { %v1049_v28 = vmul.f32 %v1934_v49, %v1015_v27  ;;  %v1237_v49 = vld [vmem:[%s2070_s10 + $0x8] sm:$0xff]  ;;  %1258 = vmatpush.msra.mxu0 %v1236_v48 }
 0x24e   :  { %1500 = vmatmul.msk.f32.vlgmr.msrb.gmra.mxu0 %vm651_vm1, %v1048_v25  ;;  %1281 = vmatpush.msra.mxu1 %v1237_v49 }
 0x24f   :  { %1501 = vmatmul.msk.f32.vlgmr.msrb.gmra.mxu1 %vm651_vm1, %v1049_v28  ;;  %1350 = vmatpush.msrb.mxu0 %v1236_v48 }
 0x250   :  { %1373 = vmatpush.msrb.mxu1 %v1237_v49 }
 0x2b8   :  { %v1118_v31 = vpop.f32.mrf.mxu2 }
 0x2b9   :  { %1506 = vmatmul.msk.f32.vlgmr.msra.gmra.mxu2 %vm651_vm1, %v1118_v31 }
 0x2c0   :  { %v1141_v34 = vpop.f32.mrf.mxu3 }
 0x2c1   :  { %v1210_v35 = vpop.f32.mrf.mxu2  ;;  %1507 = vmatmul.msk.f32.vlgmr.msra.gmra.mxu3 %vm651_vm1, %v1141_v34 }
 0x2c2   :  { %v1095_v21 = vpop.f32.mrf.mxu1  ;;  %1510 = vmatmul.msk.f32.vlgmr.msrb.gmra.mxu2 %vm651_vm1, %v1210_v35 }
 0x2c3   :  { %1505 = vmatmul.msk.f32.vlgmr.msra.gmra.mxu1 %vm651_vm1, %v1095_v21  ;;  %v1072_v36 = vpop.f32.mrf.mxu0 }
 0x2c4   :  { %1504 = vmatmul.msk.f32.vlgmr.msra.gmra.mxu0 %vm651_vm1, %v1072_v36 }
 0x2cb   :  { %v1233_v37 = vpop.f32.mrf.mxu3  ;;  %v1164_v38 = vpop.f32.mrf.mxu0 }
 0x2cc   :  { %1511 = vmatmul.msk.f32.vlgmr.msrb.gmra.mxu3 %vm651_vm1, %v1233_v37  ;;  %v1187_v40 = vpop.f32.mrf.mxu1  ;;  %1508 = vmatmul.msk.f32.vlgmr.msrb.gmra.mxu0 %vm651_vm1, %v1164_v38 }
 0x2cd   :  { %1509 = vmatmul.msk.f32.vlgmr.msrb.gmra.mxu1 %vm651_vm1, %v1187_v40 }
 0x33c   :  { %v1306_v44 = vpop.f32.mrf.mxu2 }
 0x340   :  { %v1283_v42 = vpop.f32.mrf.mxu1 }
 0x341   :  { %v1260_v45 = vpop.f32.mrf.mxu0 }
 0x342   :  { %v1424_v46 = vadd.f32 %v1283_v42, %v1260_v45 }
 0x344   :  { %v1426_v47 = vadd.f32 %v1424_v46, %v1306_v44  ;;  %v1329_v51 = vpop.f32.mrf.mxu3 }
 0x345   :  { %v1398_v57 = vpop.f32.mrf.mxu2 }
 0x346   :  { %v1428_v52 = vadd.f32 %v1426_v47, %v1329_v51 }
 0x348   :  { %v1434_v53 = vadd.f32 %v1529_v50, %v1428_v52 }
 0x349   :  { %v1352_v54 = vpop.f32.mrf.mxu0 }
 0x34a   :  { %v1375_v55 = vpop.f32.mrf.mxu1  ;;  %1436 = vst.msk [vmem:[#allocation2] sm:$0xff] %vm122_vm0, %v1434_v53 }
 0x34b   :  { %v1425_v56 = vadd.f32 %v1375_v55, %v1352_v54 }
 0x34d   :  { %v1427_v58 = vadd.f32 %v1425_v56, %v1398_v57 }
 0x34f   :  { %v1421_v59 = vpop.f32.mrf.mxu3 }
 0x350   :  { %v1429_v60 = vadd.f32 %v1427_v58, %v1421_v59 }
 0x352   :  { %v1435_v61 = vadd.f32 %v1529_v50, %v1429_v60 }
 0x354   :  { %1437 = vst.msk [vmem:[#allocation2 + $0x8] sm:$0xff] %vm122_vm0, %v1435_v61 }
 0x355   :  { %1450 = dma.vmem_to_hbm [thread:$0]  %s1443_s17, 256, %s1445_s6, [#allocation3], %s1589_s11, %s1589_s11, %s1590_s19  }
 0x356   :  { %1586 = dma.done.wait [#allocation3], 256  }
 0x357   :  { %1587 = vsyncadd [#allocation3], 4294967040 }
 0x358   :  { %1455 = vsyncpa [#allocation3], 1 }

</bundles_post_ra>
